<compile_context>
chip_gen: v5e
topology: v5e:2x2
jax: 0.10.0
libtpu: 0.0.40
codegen_flags: <defaults>
</compile_context>

<pallas_src>
import functools

import jax
import jax.numpy as jnp
from jax.experimental import pallas as pl
from jax.experimental.pallas import tpu as pltpu


def _dice_partial_kernel(x_ref, t_ref, inter_ref, sump_ref, sumt_ref,
                         *, hw_total, tiles_per_chunk, mask_tail):
    """One grid step = one (chunk, hw-tile); computes all classes for the tile.

    x_ref    : VMEM (N, C, hw_tile) logits block
    t_ref    : VMEM (N, hw_tile)    int32 labels block
    inter_ref: VMEM (1, N, C)       per-chunk partial sum of preds*one_hot
    sump_ref : VMEM (1, N, C)       per-chunk partial sum of preds
    sumt_ref : VMEM (1, N, C)       per-chunk partial sum of one_hot
    """
    t = pl.program_id(1)

    @pl.when(t == 0)
    def _():
        inter_ref[...] = jnp.zeros_like(inter_ref)
        sump_ref[...] = jnp.zeros_like(sump_ref)
        sumt_ref[...] = jnp.zeros_like(sumt_ref)

    x = x_ref[...]                                   # (N, C, hw_tile)
    n, c, hw = x.shape

    preds = jax.nn.sigmoid(x.astype(jnp.float32))    # F.sigmoid(input)
    class_ids = jax.lax.broadcasted_iota(jnp.int32, (n, c, hw), 1)
    one_hot = t_ref[...][:, None, :] == class_ids    # (N, C, hw_tile) bool

    if mask_tail:                                    # ragged final HW tile
        p = pl.program_id(0)
        start = (p * tiles_per_chunk + t) * hw
        pos = start + jax.lax.broadcasted_iota(jnp.int32, (n, c, hw), 2)
        valid = pos < hw_total
        preds = jnp.where(valid, preds, 0.0)         # where (not *) -> NaN-safe
        one_hot = jnp.logical_and(one_hot, valid)

    trues = one_hot.astype(jnp.float32)

    inter_ref[...] += jnp.sum(preds * trues, axis=-1)[None]   # (1, N, C)
    sump_ref[...] += jnp.sum(preds, axis=-1)[None]
    sumt_ref[...] += jnp.sum(trues, axis=-1)[None]


def multi_dice_loss(logits, target, weights, *,
                    vmem_budget_bytes=24 * 1024 * 1024, max_hw_tile=8192):
    """MultiDiceLoss.forward.

    logits : (N, C, H, W) float
    target : (N, H, W)    integer class labels in [0, C)
    weights: (C,)         per-class weights
    returns scalar float32 loss
    """
    N, C, H, W = logits.shape
    HW = H * W

    # Free reshapes only (no HBM transpose): native NCHW layout is kept.
    x = logits.reshape(N, C, HW)
    t = target.reshape(N, HW).astype(jnp.int32)
    w = jnp.asarray(weights, dtype=jnp.float32).reshape(C)

    # ---- tile-size selection: largest 128-multiple within the VMEM budget ----
    # bytes per HW element: 2x-buffered f32 logits block + 2x-buffered int32
    # target block + f32 preds/one_hot temporaries.
    per_hw = (2 * N * C + 2 * N + 2 * N * C) * 4
    tile_cap = max(128, min(int(max_hw_tile),
                            (vmem_budget_bytes // per_hw) // 128 * 128))
    if HW <= tile_cap:
        hw_tile, num_tiles = HW, 1           # full-dim block is always legal
    else:
        hw_tile = tile_cap
        num_tiles = pl.cdiv(HW, hw_tile)
    mask_tail = (HW % hw_tile) != 0

    # Outer "parallel" chunks over HW tiles (2-TC sharding on v7x).
    num_chunks = 2 if (num_tiles >= 2 and num_tiles % 2 == 0) else 1
    tiles_per_chunk = num_tiles // num_chunks

    kernel = functools.partial(
        _dice_partial_kernel,
        hw_total=HW, tiles_per_chunk=tiles_per_chunk, mask_tail=mask_tail)

    part_shape = jax.ShapeDtypeStruct((num_chunks, N, C), jnp.float32)
    part_spec = pl.BlockSpec((1, N, C), lambda p, i: (p, 0, 0))

    inter, sum_p, sum_t = pl.pallas_call(
        kernel,
        out_shape=(part_shape, part_shape, part_shape),
        grid=(num_chunks, tiles_per_chunk),
        in_specs=[
            pl.BlockSpec((N, C, hw_tile),
                         lambda p, i: (0, 0, p * tiles_per_chunk + i)),
            pl.BlockSpec((N, hw_tile),
                         lambda p, i: (0, p * tiles_per_chunk + i)),
        ],
        out_specs=(part_spec, part_spec, part_spec),
        compiler_params=pltpu.CompilerParams(
            dimension_semantics=("parallel", "arbitrary"),
            vmem_limit_bytes=32 * 1024 * 1024,
        ),
    )(x, t)

    # ---- tiny finalize on (N, C) scalars in plain JAX ----
    inter = jnp.sum(inter, axis=0)                    # (N, C)
    sum_p = jnp.sum(sum_p, axis=0)
    sum_t = jnp.sum(sum_t, axis=0)
    scores = 2.0 * (inter + 1.0) / (sum_p + sum_t + 1.0)          # (N, C)
    score_c = jnp.clip(jnp.sum(scores, axis=0) / N, 0.0, 1.0)     # (C,) clamp
    return jnp.sum(w * (1.0 - score_c))


def _reference_multi_dice_loss(logits, target, weights):
    """Pure-JAX mirror of the PyTorch module, for verification."""
    N, C, H, W = logits.shape
    t_flat = target.reshape(N, -1)
    total = jnp.float32(0.0)
    for c in range(C):
        p = jax.nn.sigmoid(logits[:, c].reshape(N, -1).astype(jnp.float32))
        t = (t_flat == c).astype(jnp.float32)
        inter = jnp.sum(p * t, axis=1)
        scores = 2.0 * (inter + 1.0) / (jnp.sum(p, axis=1) + jnp.sum(t, axis=1) + 1.0)
        score = jnp.clip(jnp.sum(scores) / N, 0.0, 1.0)
        total = total + (1.0 - score) * jnp.float32(weights[c])
    return total


if __name__ == "__main__":
    class_num = 4
    class_weights = [0.1, 0.2, 0.3, 0.4]
    key = jax.random.PRNGKey(0)

    # 1) Small default case: single full-HW tile.
    N, H, W = 2, 16, 16
    k1, k2 = jax.random.split(key)
    logits = jax.random.normal(k1, (N, class_num, H, W), dtype=jnp.float32)
    target = jax.random.randint(k2, (N, H, W), 0, class_num, dtype=jnp.int32)

    loss = jax.block_until_ready(multi_dice_loss(logits, target, class_weights))
    ref = jax.block_until_ready(
        _reference_multi_dice_loss(logits, target, class_weights))
    assert jnp.allclose(loss, ref, atol=1e-5, rtol=1e-5), (loss, ref)

    # 2) Force the tiled / parallel-chunk path (hw_tile=128, 2 chunks, no mask).
    loss2 = jax.block_until_ready(
        multi_dice_loss(logits, target, class_weights, max_hw_tile=128))
    assert jnp.allclose(loss2, ref, atol=1e-5, rtol=1e-5), (loss2, ref)

    # 3) Force the ragged-tail masking path (HW=200, hw_tile=128).
    k3, k4 = jax.random.split(k2)
    H2, W2 = 10, 20
    logits3 = jax.random.normal(k3, (N, class_num, H2, W2), dtype=jnp.float32)
    target3 = jax.random.randint(k4, (N, H2, W2), 0, class_num, dtype=jnp.int32)
    loss3 = jax.block_until_ready(
        multi_dice_loss(logits3, target3, class_weights, max_hw_tile=128))
    ref3 = jax.block_until_ready(
        _reference_multi_dice_loss(logits3, target3, class_weights))
    assert jnp.allclose(loss3, ref3, atol=1e-5, rtol=1e-5), (loss3, ref3)

    print("KERNEL_OK")
</pallas_src>

<mosaic_0001>
module attributes {stable_mosaic.version = 11 : i64} {
  func.func @_dice_partial_kernel(%arg0: i32, %arg1: i32, %arg2: memref<2x4x256xf32, #tpu.memory_space<vmem>>, %arg3: memref<2x256xi32, #tpu.memory_space<vmem>>, %arg4: memref<1x2x4xf32, #tpu.memory_space<vmem>>, %arg5: memref<1x2x4xf32, #tpu.memory_space<vmem>>, %arg6: memref<1x2x4xf32, #tpu.memory_space<vmem>>) attributes {dimension_semantics = [#tpu.dimension_semantics<parallel>, #tpu.dimension_semantics<arbitrary>], iteration_bounds = array<i64: 1, 1>, scalar_prefetch = 0 : i64, scratch_operands = 0 : i64, tpu.core_type = #tpu.core_type<tc>, window_params = [{transform_indices = @transform_0, window_bounds = array<i64: 2, 4, 256>}, {transform_indices = @transform_1, window_bounds = array<i64: 2, 256>}, {transform_indices = @transform_2, window_bounds = array<i64: 1, 2, 4>}, {transform_indices = @transform_3, window_bounds = array<i64: 1, 2, 4>}, {transform_indices = @transform_4, window_bounds = array<i64: 1, 2, 4>}]} {
    %c0_i32 = arith.constant 0 : i32
    %0 = arith.cmpi eq, %arg1, %c0_i32 : i32
    %1 = arith.extui %0 : i1 to i32
    %c0_i32_0 = arith.constant 0 : i32
    %2 = arith.cmpi ne, %1, %c0_i32_0 : i32
    scf.if %2 {
      %cst_26 = arith.constant 0.000000e+00 : f32
      %32 = vector.broadcast %cst_26 : f32 to vector<1x2x4xf32>
      %c0_27 = arith.constant 0 : index
      %c0_28 = arith.constant 0 : index
      %c0_29 = arith.constant 0 : index
      %33 = vector.load %arg4[%c0_27, %c0_28, %c0_29] : memref<1x2x4xf32, #tpu.memory_space<vmem>>, vector<1x2x4xf32>
      tpu.vector_store %arg4[%c0_27, %c0_28, %c0_29], %32 {strides = array<i32>} : memref<1x2x4xf32, #tpu.memory_space<vmem>>, vector<1x2x4xf32>,
      %cst_30 = arith.constant 0.000000e+00 : f32
      %34 = vector.broadcast %cst_30 : f32 to vector<1x2x4xf32>
      %c0_31 = arith.constant 0 : index
      %c0_32 = arith.constant 0 : index
      %c0_33 = arith.constant 0 : index
      %35 = vector.load %arg5[%c0_31, %c0_32, %c0_33] : memref<1x2x4xf32, #tpu.memory_space<vmem>>, vector<1x2x4xf32>
      tpu.vector_store %arg5[%c0_31, %c0_32, %c0_33], %34 {strides = array<i32>} : memref<1x2x4xf32, #tpu.memory_space<vmem>>, vector<1x2x4xf32>,
      %cst_34 = arith.constant 0.000000e+00 : f32
      %36 = vector.broadcast %cst_34 : f32 to vector<1x2x4xf32>
      %c0_35 = arith.constant 0 : index
      %c0_36 = arith.constant 0 : index
      %c0_37 = arith.constant 0 : index
      %37 = vector.load %arg6[%c0_35, %c0_36, %c0_37] : memref<1x2x4xf32, #tpu.memory_space<vmem>>, vector<1x2x4xf32>
      tpu.vector_store %arg6[%c0_35, %c0_36, %c0_37], %36 {strides = array<i32>} : memref<1x2x4xf32, #tpu.memory_space<vmem>>, vector<1x2x4xf32>,
    } else {
    }
    %c0 = arith.constant 0 : index
    %c0_1 = arith.constant 0 : index
    %c0_2 = arith.constant 0 : index
    %3 = vector.load %arg2[%c0, %c0_1, %c0_2] : memref<2x4x256xf32, #tpu.memory_space<vmem>>, vector<2x4x256xf32>
    %4 = arith.negf %3 : vector<2x4x256xf32>
    %5 = math.exp %4 : vector<2x4x256xf32>
    %cst = arith.constant 1.000000e+00 : f32
    %6 = vector.broadcast %cst : f32 to vector<2x4x256xf32>
    %7 = arith.addf %6, %5 : vector<2x4x256xf32>
    %8 = arith.divf %6, %7 : vector<2x4x256xf32>
    %9 = tpu.iota {dimensions = array<i32: 1>} : vector<2x4x256xi32>
    %c0_3 = arith.constant 0 : index
    %c0_4 = arith.constant 0 : index
    %10 = vector.load %arg3[%c0_3, %c0_4] : memref<2x256xi32, #tpu.memory_space<vmem>>, vector<2x256xi32>
    %11 = vector.shape_cast %10 : vector<2x256xi32> to vector<2x1x256xi32>
    %12 = vector.broadcast %11 : vector<2x1x256xi32> to vector<2x4x256xi32>
    %13 = arith.cmpi eq, %12, %9 : vector<2x4x256xi32>
    %14 = arith.extui %13 : vector<2x4x256xi1> to vector<2x4x256xi32>
    %15 = arith.sitofp %14 : vector<2x4x256xi32> to vector<2x4x256xf32>
    %c0_5 = arith.constant 0 : index
    %c0_6 = arith.constant 0 : index
    %c0_7 = arith.constant 0 : index
    %16 = vector.load %arg4[%c0_5, %c0_6, %c0_7] : memref<1x2x4xf32, #tpu.memory_space<vmem>>, vector<1x2x4xf32>
    %17 = arith.mulf %8, %15 : vector<2x4x256xf32>
    %cst_8 = arith.constant dense<0.000000e+00> : vector<2x4xf32>
    %18 = vector.multi_reduction <add>, %17, %cst_8 [2] : vector<2x4x256xf32> to vector<2x4xf32>
    %19 = vector.shape_cast %18 : vector<2x4xf32> to vector<1x2x4xf32>
    %20 = arith.addf %16, %19 : vector<1x2x4xf32>
    %c0_9 = arith.constant 0 : index
    %c0_10 = arith.constant 0 : index
    %c0_11 = arith.constant 0 : index
    %21 = vector.load %arg4[%c0_9, %c0_10, %c0_11] : memref<1x2x4xf32, #tpu.memory_space<vmem>>, vector<1x2x4xf32>
    tpu.vector_store %arg4[%c0_9, %c0_10, %c0_11], %20 {strides = array<i32>} : memref<1x2x4xf32, #tpu.memory_space<vmem>>, vector<1x2x4xf32>,
    %c0_12 = arith.constant 0 : index
    %c0_13 = arith.constant 0 : index
    %c0_14 = arith.constant 0 : index
    %22 = vector.load %arg5[%c0_12, %c0_13, %c0_14] : memref<1x2x4xf32, #tpu.memory_space<vmem>>, vector<1x2x4xf32>
    %cst_15 = arith.constant dense<0.000000e+00> : vector<2x4xf32>
    %23 = vector.multi_reduction <add>, %8, %cst_15 [2] : vector<2x4x256xf32> to vector<2x4xf32>
    %24 = vector.shape_cast %23 : vector<2x4xf32> to vector<1x2x4xf32>
    %25 = arith.addf %22, %24 : vector<1x2x4xf32>
    %c0_16 = arith.constant 0 : index
    %c0_17 = arith.constant 0 : index
    %c0_18 = arith.constant 0 : index
    %26 = vector.load %arg5[%c0_16, %c0_17, %c0_18] : memref<1x2x4xf32, #tpu.memory_space<vmem>>, vector<1x2x4xf32>
    tpu.vector_store %arg5[%c0_16, %c0_17, %c0_18], %25 {strides = array<i32>} : memref<1x2x4xf32, #tpu.memory_space<vmem>>, vector<1x2x4xf32>,
    %c0_19 = arith.constant 0 : index
    %c0_20 = arith.constant 0 : index
    %c0_21 = arith.constant 0 : index
    %27 = vector.load %arg6[%c0_19, %c0_20, %c0_21] : memref<1x2x4xf32, #tpu.memory_space<vmem>>, vector<1x2x4xf32>
    %cst_22 = arith.constant dense<0.000000e+00> : vector<2x4xf32>
    %28 = vector.multi_reduction <add>, %15, %cst_22 [2] : vector<2x4x256xf32> to vector<2x4xf32>
    %29 = vector.shape_cast %28 : vector<2x4xf32> to vector<1x2x4xf32>
    %30 = arith.addf %27, %29 : vector<1x2x4xf32>
    %c0_23 = arith.constant 0 : index
    %c0_24 = arith.constant 0 : index
    %c0_25 = arith.constant 0 : index
    %31 = vector.load %arg6[%c0_23, %c0_24, %c0_25] : memref<1x2x4xf32, #tpu.memory_space<vmem>>, vector<1x2x4xf32>
    tpu.vector_store %arg6[%c0_23, %c0_24, %c0_25], %30 {strides = array<i32>} : memref<1x2x4xf32, #tpu.memory_space<vmem>>, vector<1x2x4xf32>,
    return
  }
  func.func @transform_0(%arg0: i32, %arg1: i32) -> (i32, i32, i32) {
    %c1_i32 = arith.constant 1 : i32
    %0 = arith.muli %arg0, %c1_i32 : i32
    %1 = arith.addi %0, %arg1 : i32
    %c0_i32 = arith.constant 0 : i32
    %c0_i32_0 = arith.constant 0 : i32
    %c0_i32_1 = arith.constant 0 : i32
    return %c0_i32, %c0_i32_0, %1 : i32, i32, i32
  }
  func.func @transform_1(%arg0: i32, %arg1: i32) -> (i32, i32) {
    %c1_i32 = arith.constant 1 : i32
    %0 = arith.muli %arg0, %c1_i32 : i32
    %1 = arith.addi %0, %arg1 : i32
    %c0_i32 = arith.constant 0 : i32
    %c0_i32_0 = arith.constant 0 : i32
    return %c0_i32, %1 : i32, i32
  }
  func.func @transform_2(%arg0: i32, %arg1: i32) -> (i32, i32, i32) {
    %c0_i32 = arith.constant 0 : i32
    %c0_i32_0 = arith.constant 0 : i32
    %c0_i32_1 = arith.constant 0 : i32
    return %arg0, %c0_i32, %c0_i32_0 : i32, i32, i32
  }
  func.func @transform_3(%arg0: i32, %arg1: i32) -> (i32, i32, i32) {
    %c0_i32 = arith.constant 0 : i32
    %c0_i32_0 = arith.constant 0 : i32
    %c0_i32_1 = arith.constant 0 : i32
    return %arg0, %c0_i32, %c0_i32_0 : i32, i32, i32
  }
  func.func @transform_4(%arg0: i32, %arg1: i32) -> (i32, i32, i32) {
    %c0_i32 = arith.constant 0 : i32
    %c0_i32_0 = arith.constant 0 : i32
    %c0_i32_1 = arith.constant 0 : i32
    return %arg0, %c0_i32, %c0_i32_0 : i32, i32, i32
  }
}

</mosaic_0001>

<bundles_post_ra>
// kernel: tpu_custom_call.1
= control target key start
LH: loop header
LB: loop body
LE: loop exit
PB: predicated region body
PF: predicated region fallthrough
CT: control target
= control target key end

     0   :  { %10 = vsyncpa [#allocation3], 0  ;;  %s521_s0 = inlined_call_operand.hbm [shape: f32[2,4,256], index: 0, kind: input, shape index: {}]   ;;  %s522_s1 = inlined_call_operand.hbm [shape: s32[2,256], index: 1, kind: input, shape index: {}]   ;;  %s523_s2 = inlined_call_operand.hbm [shape: f32[1,2,4], index: 2, kind: output, shape index: {0}]   ;;  %s524_s3 = inlined_call_operand.hbm [shape: f32[1,2,4], index: 3, kind: output, shape index: {1}]   ;;  %s525_s4 = inlined_call_operand.hbm [shape: f32[1,2,4], index: 4, kind: output, shape index: {2}]  }
   0x1   :  { %11 = vsyncpa [#allocation6], 0 }
   0x2   :  { %12 = vsyncpa [#allocation4], 0 }
   0x3   :  { %13 = vsyncpa [#allocation9], 0  ;;  %s22_s17 = sshll.u32 %s521_s0, 4  ;;  %s439_s18 = smov [#allocation2]   ;;  %s23_s17 = int_to_ptr.hbm [resolvable:$true] %s22_s17 }
   0x4   :  { %s24_s19 = sshll.u32 %s439_s18, 4  ;;  %s40_s22 = sshll.u32 %s522_s1, 4  ;;  %s25_s19 = int_to_ptr.vmem [resolvable:$true] %s24_s19  ;;  %s41_s22 = int_to_ptr.hbm [resolvable:$true] %s40_s22 }
   0x5   :  { %s440_s23 = smov 128   ;;  %s441_s24 = smov 8  }
   0x6   :  { %30 = dma.hbm_to_vmem [thread:$0]  %s23_s17, 256, %s25_s19, [#allocation3], %s440_s23, %s440_s23, %s441_s24  }
   0x7   :  { %s442_s25 = smov [#allocation5]  }
   0x8   :  { %s42_s26 = sshll.u32 %s442_s25, 4  ;;  %s43_s26 = int_to_ptr.vmem [resolvable:$true] %s42_s26 }
   0x9   :  { %45 = dma.hbm_to_vmem [thread:$0]  %s41_s22, 64, %s43_s26, [#allocation6]  }
   0xa   :  { %431 = dma.done.wait [#allocation3], 256  }
   0xb   :  { %432 = vsyncadd [#allocation3], 4294967040 }
   0xc   :  { %433 = dma.done.wait [#allocation6], 64  }
   0xd   :  { %434 = vsyncadd [#allocation6], 4294967232  ;;  %v106_v0 = vlaneseq  ;;  %vm112_vm0 = vcmask 1040384   ;;  %vm114_vm1 = vcmask 1042434   ;;  %vm116_vm2 = vcmask 1041408   ;;  %v66_v2 = vld [vmem:[#allocation2] sm:$0xff] }
   0xe   :  { %v108_v1 = vld [vmem:[#allocation5] sm:$0xf]  ;;  %vm118_vm3 = vcmask 1041409   ;;  %vm120_vm4 = vcmask 1043459   ;;  %v67_v3 = vld [vmem:[#allocation2 + $0x8] sm:$0xff]  ;;  %vm122_vm5 = vcmask 1042433  }
   0xf   :  { %v109_v4 = vrot.slane %v108_v1, 1  ;;  %v110_v5 = vrot.slane %v108_v1, 2  ;;  %v111_v6 = vrot.slane %v108_v1, 3  ;;  %v289_v7 = vmul.f32 -1.442695, %v66_v2  ;;  %s444_s0 = smov [#allocation7]  }
  0x10   :  { %v107_v8 = vshrl.u32 %v106_v0, 7  ;;  %v290_v9 = vmul.f32 -1.442695, %v67_v3  ;;  %vm148_vm8 = vcmask 1043456   ;;  %v443_v19 = vmov 0.0   ;;  %s245_s1 = sshll.u32 %s444_s0, 4  ;;  %s246_s1 = int_to_ptr.vmem [resolvable:$true] %s245_s1 }
  0x11   :  { %v113_v10 = vsel %vm112_vm0, %v108_v1, %v109_v4  ;;  %v115_v11 = vsel %vm114_vm1, %v110_v5, %v111_v6  ;;  %303 = vpow2.f32 %v289_v7  ;;  %v119_v12 = vsel %vm118_vm3, %v108_v1, %v109_v4  ;;  %s247_s29 = sshll.u32 %s523_s2, 4  ;;  %s445_s30 = smov [#allocation8]   ;;  %s248_s29 = int_to_ptr.hbm [resolvable:$true] %s247_s29 }
  0x12   :  { %v117_v13 = vsel %vm116_vm2, %v113_v10, %v115_v11  ;;  %v121_v14 = vsel %vm120_vm4, %v110_v5, %v111_v6  ;;  %305 = vpow2.f32 %v290_v9  ;;  %vm62_vm4 = vcmask 25600   ;;  %s256_s5 = sshll.u32 %s445_s30, 4  ;;  %s258_s8 = sshll.u32 %s524_s3, 4  ;;  %s257_s5 = int_to_ptr.vmem [resolvable:$true] %s256_s5  ;;  %s259_s8 = int_to_ptr.hbm [resolvable:$true] %s258_s8 }
  0x13   :  { %v125_v15 = vperm.slane %v117_v13, 0  ;;  %v126_v16 = vperm.slane %v117_v13, 1  ;;  %v123_v17 = vsel %vm122_vm5, %v119_v12, %v121_v14  ;;  %65 = vst.msk [vmem:[#allocation10] sm:$0x3] %vm62_vm4, %v443_v19  ;;  %s446_s9 = smov [#allocation10]   ;;  %s269_s12 = sshll.u32 %s525_s4, 4  ;;  %s270_s12 = int_to_ptr.hbm [resolvable:$true] %s269_s12 }
  0x14   :  { %v124_v18 = vrot.slane %v123_v17, 1  ;;  %63 = vst.msk [vmem:[#allocation7] sm:$0x3] %vm62_vm4, %v443_v19  ;;  %s267_s2 = sshll.u32 %s446_s9, 4  ;;  %s268_s2 = int_to_ptr.vmem [resolvable:$true] %s267_s2 }
  0x15   :  { %vm129_vm6 = vcmp.eq.s32.totalorder %v125_v15, %v107_v8  ;;  %vm130_vm7 = vcmp.eq.s32.totalorder %v126_v16, %v107_v8  ;;  %64 = vst.msk [vmem:[#allocation8] sm:$0x3] %vm62_vm4, %v443_v19 }
  0x16   :  { %v291_v20 = vsel %vm129_vm6, 1.0, %v443_v19  ;;  %v292_v21 = vsel %vm130_vm7, 1.0, %v443_v19  ;;  %v127_v22 = vperm.slane %v124_v18, 0  ;;  %v128_v23 = vperm.slane %v124_v18, 1 }
  0x17   :  { %v304_v24 = vpop.eup %303  ;;  %v222_v25 = vsel %vm148_vm8, %v291_v20, 0.0  ;;  %v223_v26 = vsel %vm148_vm8, %v292_v21, 0.0  ;;  %v146_v39 = vrot.slane %v292_v21, 4  ;;  %v181_v21 = vand.u32 127, %v106_v0 }
  0x18   :  { %v306_v27 = vpop.eup %305  ;;  %v224_v28 = vadd.f32 %v223_v26, %v222_v25  ;;  %v74_v29 = vadd.f32 1.0, %v304_v24  ;;  %vm131_vm9 = vcmp.eq.s32.totalorder %v127_v22, %v107_v8  ;;  %vm132_vm10 = vcmp.eq.s32.totalorder %v128_v23, %v107_v8 }
  0x19   :  { %v75_v30 = vadd.f32 1.0, %v306_v27  ;;  %v293_v31 = vsel %vm131_vm9, 1.0, %v443_v19  ;;  %v294_v32 = vsel %vm132_vm10, 1.0, %v443_v19  ;;  %v149_v53 = vsel %vm148_vm8, %v291_v20, %v146_v39 }
  0x1a   :  { %225 = vadd.xlane.f32.xlu2 %v224_v28  ;;  %307 = vrcp.f32 %v74_v29  ;;  %v227_v33 = vsel %vm148_vm8, %v293_v31, 0.0  ;;  %v228_v34 = vsel %vm148_vm8, %v294_v32, 0.0  ;;  %vm81_vm11 = vweird.f32 %v74_v29  ;;  %v221_v25 = vld [vmem:[#allocation10] sm:$0x3] }
  0x1b   :  { %309 = vrcp.f32 %v75_v30  ;;  %v229_v35 = vadd.f32 %v228_v34, %v227_v33  ;;  %v87_v40 = vand.u32 2147483648, %v74_v29  ;;  %v85_v43 = vand.u32 2147483647, %v74_v29 }
  0x1c   :  { %v102_v44 = vand.u32 2147483648, %v75_v30  ;;  %vm96_vm13 = vweird.f32 %v75_v30  ;;  %v100_v46 = vand.u32 2147483647, %v75_v30  ;;  %v147_v48 = vrot.slane %v294_v32, 4 }
  0x1d   :  { %v88_v49 = vor.u32 1.1754944e-38, %v87_v40  ;;  %vm86_vm0 = vcmp.eq.f32.partialorder %v85_v43, 8.507059e+37 }
  0x1e   :  { %v103_v52 = vor.u32 1.1754944e-38, %v102_v44  ;;  %vm101_vm2 = vcmp.eq.f32.partialorder %v100_v46, 8.507059e+37  ;;  %v150_v56 = vsel %vm148_vm8, %v293_v31, %v147_v48  ;;  %v141_v31 = vld [vmem:[#allocation7] sm:$0x3] }
  0x20   :  { %v308_v36 = vpop.eup %307 }
  0x21   :  { %v310_v37 = vpop.eup %309  ;;  %v77_v38 = vmul.f32 %v308_v36, %v74_v29  ;;  %vm82_vm12 = vweird.f32 %v308_v36 }
  0x22   :  { %230 = vadd.xlane.f32.xlu2 %v229_v35  ;;  %v92_v41 = vmul.f32 %v310_v37, %v75_v30  ;;  %vm97_vm14 = vweird.f32 %v310_v37  ;;  %vm83_vm15 = vmor %vm81_vm11, %vm82_vm12 }
  0x23   :  { %v78_v42 = vsub.f32 1.0, %v77_v38  ;;  %vm98_vm1 = vmor %vm96_vm13, %vm97_vm14 }
  0x24   :  { %v93_v45 = vsub.f32 1.0, %v92_v41 }
  0x25   :  { %v79_v47 = vmul.f32 %v308_v36, %v78_v42 }
  0x26   :  { %v94_v50 = vmul.f32 %v310_v37, %v93_v45 }
  0x27   :  { %v80_v51 = vadd.f32 %v308_v36, %v79_v47 }
  0x28   :  { %v95_v54 = vadd.f32 %v310_v37, %v94_v50 }
  0x29   :  { %v84_v55 = vsel %vm83_vm15, %v308_v36, %v80_v51  ;;  %v189_v36 = vld [vmem:[#allocation8] sm:$0x3] }
  0x2a   :  { %v89_v57 = vsel %vm86_vm0, %v88_v49, %v84_v55  ;;  %v99_v58 = vsel %vm98_vm1, %v310_v37, %v95_v54 }
  0x2b   :  { %v153_v59 = vmul.f32 %v149_v53, %v89_v57  ;;  %v104_v60 = vsel %vm101_vm2, %v103_v52, %v99_v58 }
  0x2c   :  { %v154_v61 = vmul.f32 %v150_v56, %v104_v60 }
  0x2d   :  { %157 = vst [vmem:[#allocation1] ss:$2 sm:$0xff] %v153_v59 }
  0x2e   :  { %161 = vst [vmem:[#allocation1 + $0x10] ss:$2 sm:$0xff] %v154_v61 }
  0x34   :  { %v158_v62 = vld.sshfl [vmem:[#allocation1] sm:$0xff pattern:$0x75316420]  ;;  %v159_v63 = vld.sshfl [vmem:[#allocation1 + $0x8] sm:$0xff pattern:$0x75316420] }
  0x35   :  { %v168_v1 = vsel %vm148_vm8, %v158_v62, 0.0  ;;  %v169_v2 = vsel %vm148_vm8, %v159_v63, 0.0  ;;  %192 = vst [vmem:[#allocation1] ss:$2 sm:$0xff] %v89_v57 }
  0x36   :  { %v170_v3 = vadd.f32 %v169_v2, %v168_v1  ;;  %v162_v4 = vld.sshfl [vmem:[#allocation1 + $0x10] sm:$0xff pattern:$0x75316420]  ;;  %v163_v5 = vld.sshfl [vmem:[#allocation1 + $0x18] sm:$0xff pattern:$0x75316420] }
  0x37   :  { %196 = vst [vmem:[#allocation1 + $0x10] ss:$2 sm:$0xff] %v104_v60  ;;  %v173_v6 = vsel %vm148_vm8, %v162_v4, 0.0  ;;  %v174_v7 = vsel %vm148_vm8, %v163_v5, 0.0 }
  0x38   :  { %171 = vadd.xlane.f32.xlu1 %v170_v3  ;;  %v175_v10 = vadd.f32 %v174_v7, %v173_v6 }
  0x3c   :  { %v193_v8 = vld.sshfl [vmem:[#allocation1] sm:$0xff pattern:$0x75316420]  ;;  %v194_v9 = vld.sshfl [vmem:[#allocation1 + $0x8] sm:$0xff pattern:$0x75316420] }
  0x3d   :  { %v203_v11 = vsel %vm148_vm8, %v193_v8, 0.0  ;;  %v204_v12 = vsel %vm148_vm8, %v194_v9, 0.0 }
  0x3e   :  { %v205_v13 = vadd.f32 %v204_v12, %v203_v11  ;;  %v197_v14 = vld.sshfl [vmem:[#allocation1 + $0x10] sm:$0xff pattern:$0x75316420]  ;;  %v198_v15 = vld.sshfl [vmem:[#allocation1 + $0x18] sm:$0xff pattern:$0x75316420] }
  0x3f   :  { %v208_v16 = vsel %vm148_vm8, %v197_v14, 0.0  ;;  %v209_v17 = vsel %vm148_vm8, %v198_v15, 0.0 }
  0x40   :  { %206 = vadd.xlane.f32.xlu0 %v205_v13  ;;  %176 = vadd.xlane.f32.xlu1 %v175_v10  ;;  %v210_v18 = vadd.f32 %v209_v17, %v208_v16 }
  0x48   :  { %211 = vadd.xlane.f32.xlu0 %v210_v18 }
  0x8d   :  { %v226_v20 = vpop.xlane.xlu2 %225 }
  0x8e   :  { %v234_v22 = vperm.slane %v226_v20, %v181_v21 }
  0x95   :  { %v231_v23 = vpop.xlane.xlu2 %230 }
  0x96   :  { %v235_v24 = vperm.slane %v231_v23, %v181_v21 }
  0x98   :  { %v236_v26 = vsel %vm118_vm3, %v235_v24, %v234_v22 }
  0x99   :  { %v238_v27 = vadd.f32 %v236_v26, %v221_v25 }
  0x9b   :  { %239 = vst.msk [vmem:[#allocation10] sm:$0x3] %vm62_vm4, %v238_v27 }
  0xab   :  { %v172_v28 = vpop.xlane.xlu1 %171 }
  0xac   :  { %v182_v0 = vperm.slane %v172_v28, %v181_v21 }
  0xb3   :  { %v207_v29 = vpop.xlane.xlu0 %206  ;;  %v177_v30 = vpop.xlane.xlu1 %176 }
  0xb4   :  { %v183_v32 = vperm.slane %v177_v30, %v181_v21  ;;  %v215_v35 = vperm.slane %v207_v29, %v181_v21 }
  0xb6   :  { %v184_v19 = vsel %vm118_vm3, %v183_v32, %v182_v0 }
  0xb7   :  { %v186_v33 = vadd.f32 %v184_v19, %v141_v31 }
  0xb9   :  { %188 = vst.msk [vmem:[#allocation7] sm:$0x3] %vm62_vm4, %v186_v33 }
  0xba   :  { %250 = dma.vmem_to_hbm [thread:$0]  %s246_s1, 32, %s248_s29, [#allocation4]  }
  0xbb   :  { %v212_v34 = vpop.xlane.xlu0 %211 }
  0xbc   :  { %v216_v37 = vperm.slane %v212_v34, %v181_v21 }
  0xbe   :  { %v217_v38 = vsel %vm118_vm3, %v216_v37, %v215_v35 }
  0xbf   :  { %v219_v39 = vadd.f32 %v217_v38, %v189_v36 }
  0xc1   :  { %220 = vst.msk [vmem:[#allocation8] sm:$0x3] %vm62_vm4, %v219_v39 }
  0xc2   :  { %261 = dma.vmem_to_hbm [thread:$0]  %s257_s5, 32, %s259_s8, [#allocation9]  }
  0xc3   :  { %272 = dma.vmem_to_hbm [thread:$0]  %s268_s2, 32, %s270_s12, [#allocation9]  }
  0xc4   :  { %435 = dma.done.wait [#allocation4], 32  }
  0xc5   :  { %436 = vsyncadd [#allocation4], 4294967264 }
  0xc6   :  { %437 = dma.done.wait [#allocation9], 64  }
  0xc7   :  { %438 = vsyncadd [#allocation9], 4294967232 }
  0xc8   :  { %285 = vsyncpa [#allocation3], 1 }
  0xc9   :  { %286 = vsyncpa [#allocation6], 1 }
  0xca   :  { %287 = vsyncpa [#allocation4], 1 }
  0xcb   :  { %288 = vsyncpa [#allocation9], 1 }

</bundles_post_ra>
